<compile_context>
chip_gen: v7x
topology: tpu7x:2x2x1
jax: 0.10.0
libtpu: 0.0.40
codegen_flags: <defaults>
</compile_context>

<pallas_src>
import jax
import jax.numpy as jnp
from jax.experimental import pallas as pl
from jax.experimental.pallas import tpu as pltpu


# tap order t = ky*3 + kx  <->  (dy, dx) = (ky-1, kx-1)
_OFFSETS = tuple((dy, dx) for dy in (-1, 0, 1) for dx in (-1, 0, 1))


def _make_preact_kernel(C, W, BP):
    """Kernel over one (C, BP) tile (B images side by side on the lane axis)."""

    def kernel(x_ref, mask_ref, s1_ref, b1_ref, w1_ref, b2_ref, w2_ref,
               out_ref, col_ref):
        x = x_ref[...]                                       # (C, BP) float32

        def conv3x3(act, w):
            # im2col built incrementally into the VMEM scratch (one tap live at
            # a time), then a single (C, 9C) x (9C, BP) MXU matmul.
            for t, (dy, dx) in enumerate(_OFFSETS):
                s = dy * W + dx                  # tap[p] = act[p + s] when valid
                if s == 0:
                    tap = act                    # center tap: mask is all ones
                else:
                    rolled = pltpu.roll(act, shift=(-s) % BP, axis=1)
                    tap = rolled * mask_ref[pl.ds(t, 1), :]  # (1,BP) bcast over C
                col_ref[pl.ds(t * C, C), :] = tap
            return jnp.dot(w, col_ref[...], preferred_element_type=jnp.float32)

        # bn1 + relu (pre-activation)
        a1 = jnp.maximum(x * s1_ref[...] + b1_ref[...], 0.0)
        # conv1 (bn2's scale pre-folded into its output channels) + bn2 shift + relu
        a2 = jnp.maximum(conv3x3(a1, w1_ref[...]) + b2_ref[...], 0.0)
        # conv2
        o2 = conv3x3(a2, w2_ref[...])
        # residual add (downsample is None -> residual = original x)
        out_ref[...] = (o2 + x).astype(out_ref.dtype)

    return kernel


def _boundary_masks(H, W, B):
    """(9, B*P) f32 validity masks for the 9 taps, tiled per image along lanes."""
    P = H * W
    pos = jnp.arange(P, dtype=jnp.int32)
    yy = pos // W
    xx = pos % W
    rows = []
    for dy, dx in _OFFSETS:
        m = ((yy + dy >= 0) & (yy + dy < H) & (xx + dx >= 0) & (xx + dx < W))
        rows.append(m)
    masks = jnp.stack(rows, axis=0).astype(jnp.float32)      # (9, P)
    return jnp.tile(masks, (1, B))                           # (9, B*P)


def preact_basic_block(x_nchw, params, eps=1e-5, max_images_per_step=8):
    """Wrapper: NCHW in / NCHW out, matching the PyTorch module (eval-mode BN)."""
    # TODO(synk): training-mode BatchNorm (batch statistics + running-stat
    # update) is not implemented; inference/eval semantics are used.
    N, C, H, W = x_nchw.shape
    P = H * W

    # Images per grid step: batch along the lane axis to amortize per-step
    # overhead, but keep >= 2 grid steps so both v7x TensorCores get work.
    B = 1 if N <= 1 else max(1, min(max_images_per_step, N // 2))
    G = pl.cdiv(N, B)
    N_pad = G * B
    BP = B * P                                   # multiple of 256 (P = 256)

    x = x_nchw.astype(jnp.float32)
    if N_pad != N:
        x = jnp.pad(x, ((0, N_pad - N), (0, 0), (0, 0), (0, 0)))
    # (N, C, H, W) -> (C, N*P): lane axis carries images * spatial (lane-dense).
    x = jnp.transpose(x, (1, 0, 2, 3)).reshape(C, N_pad * P)

    def fold_bn(gamma, beta, mean, var):
        scale = (gamma / jnp.sqrt(var + eps)).astype(jnp.float32)
        shift = (beta - mean * scale).astype(jnp.float32)
        return scale, shift

    s1, b1 = fold_bn(params['bn1_gamma'], params['bn1_beta'],
                     params['bn1_mean'], params['bn1_var'])
    s2, b2 = fold_bn(params['bn2_gamma'], params['bn2_beta'],
                     params['bn2_mean'], params['bn2_var'])

    # PyTorch conv weight (Cout, Cin, 3, 3) -> (Cout, ky, kx, Cin) -> (Cout, 9*Cin)
    # so column index = (ky*3 + kx)*Cin + ci, matching the kernel's tap order.
    def pack_w(w):
        return jnp.transpose(w, (0, 2, 3, 1)).reshape(C, 9 * C).astype(jnp.float32)

    # Fold bn2's per-output-channel scale into conv1's weights (host-side, once).
    w1 = pack_w(params['conv1_w']) * s2[:, None]
    w2 = pack_w(params['conv2_w'])

    s1 = s1.reshape(C, 1)
    b1 = b1.reshape(C, 1)
    b2 = b2.reshape(C, 1)
    masks = _boundary_masks(H, W, B)

    kernel = _make_preact_kernel(C, W, BP)

    # Advisory cost estimate (two 3x3 convs expressed as matmuls).
    flops = 2 * 2 * N_pad * C * (9 * C) * P
    bytes_accessed = (2 * C * N_pad * P * 4      # x in + out
                      + 2 * C * 9 * C * 4        # conv weights
                      + 9 * BP * 4               # boundary masks
                      + 3 * C * 4)               # bn scale/shifts
    cost = pl.CostEstimate(flops=flops, transcendentals=0,
                           bytes_accessed=bytes_accessed)

    out = pl.pallas_call(
        kernel,
        out_shape=jax.ShapeDtypeStruct((C, N_pad * P), jnp.float32),
        grid=(G,),
        in_specs=[
            pl.BlockSpec((C, BP), lambda g: (0, g)),       # x chunk (B images)
            pl.BlockSpec((9, BP), lambda g: (0, 0)),       # boundary masks (const)
            pl.BlockSpec((C, 1), lambda g: (0, 0)),        # bn1 scale
            pl.BlockSpec((C, 1), lambda g: (0, 0)),        # bn1 shift
            pl.BlockSpec((C, 9 * C), lambda g: (0, 0)),    # conv1 weights (bn2-scaled)
            pl.BlockSpec((C, 1), lambda g: (0, 0)),        # bn2 shift (bias)
            pl.BlockSpec((C, 9 * C), lambda g: (0, 0)),    # conv2 weights
        ],
        out_specs=pl.BlockSpec((C, BP), lambda g: (0, g)),
        scratch_shapes=[pltpu.VMEM((9 * C, BP), jnp.float32)],   # im2col scratch
        compiler_params=pltpu.CompilerParams(
            dimension_semantics=("parallel",),
            vmem_limit_bytes=32 * 1024 * 1024,
        ),
        cost_estimate=cost,
    )(x, masks, s1, b1, w1, b2, w2)

    out = out.reshape(C, N_pad, H, W).transpose(1, 0, 2, 3)
    return out[:N]


def reference_block(x, params, eps=1e-5):
    """Pure-JAX reference (PyTorch semantics, eval-mode BN) for validation."""
    def bn(v, g, b, m, s):
        g, b, m, s = (a[None, :, None, None] for a in (g, b, m, s))
        return (v - m) / jnp.sqrt(s + eps) * g + b

    def conv(v, w):
        return jax.lax.conv_general_dilated(
            v, w, window_strides=(1, 1), padding=((1, 1), (1, 1)),
            dimension_numbers=('NCHW', 'OIHW', 'NCHW'))

    residual = x
    out = jax.nn.relu(bn(x, params['bn1_gamma'], params['bn1_beta'],
                         params['bn1_mean'], params['bn1_var']))
    out = conv(out, params['conv1_w'])
    out = jax.nn.relu(bn(out, params['bn2_gamma'], params['bn2_beta'],
                         params['bn2_mean'], params['bn2_var']))
    out = conv(out, params['conv2_w'])
    return out + residual


if __name__ == "__main__":
    # Small shapes consistent with the module: inplanes = planes = 4, stride = 1.
    C, H, W = 4, 16, 16
    key = jax.random.PRNGKey(0)
    ks = jax.random.split(key, 12)

    params = {
        'bn1_gamma': jax.random.uniform(ks[0], (C,), jnp.float32, 0.5, 1.5),
        'bn1_beta':  0.1 * jax.random.normal(ks[1], (C,), jnp.float32),
        'bn1_mean':  0.1 * jax.random.normal(ks[2], (C,), jnp.float32),
        'bn1_var':   jax.random.uniform(ks[3], (C,), jnp.float32, 0.5, 1.5),
        'bn2_gamma': jax.random.uniform(ks[4], (C,), jnp.float32, 0.5, 1.5),
        'bn2_beta':  0.1 * jax.random.normal(ks[5], (C,), jnp.float32),
        'bn2_mean':  0.1 * jax.random.normal(ks[6], (C,), jnp.float32),
        'bn2_var':   jax.random.uniform(ks[7], (C,), jnp.float32, 0.5, 1.5),
        'conv1_w':   (jax.random.normal(ks[8], (C, C, 3, 3), jnp.float32)
                      / jnp.sqrt(9.0 * C)),
        'conv2_w':   (jax.random.normal(ks[9], (C, C, 3, 3), jnp.float32)
                      / jnp.sqrt(9.0 * C)),
    }

    # Primary check: the module's nominal small shape (N=2 -> 1 image/step, 2 steps).
    N = 2
    x = jax.random.normal(ks[10], (N, C, H, W), jnp.float32)
    out = jax.block_until_ready(preact_basic_block(x, params))
    ref = jax.block_until_ready(reference_block(x, params))
    assert out.shape == (N, C, H, W), out.shape
    assert jnp.allclose(out, ref, rtol=1e-4, atol=1e-4), \
        float(jnp.max(jnp.abs(out - ref)))

    # Secondary check: batched lane axis (N=8 -> 4 images/step, 2 steps) to
    # verify taps do not bleed across image boundaries after the roll.
    N2 = 8
    x2 = jax.random.normal(ks[11], (N2, C, H, W), jnp.float32)
    out2 = jax.block_until_ready(preact_basic_block(x2, params))
    ref2 = jax.block_until_ready(reference_block(x2, params))
    assert out2.shape == (N2, C, H, W), out2.shape
    assert jnp.allclose(out2, ref2, rtol=1e-4, atol=1e-4), \
        float(jnp.max(jnp.abs(out2 - ref2)))

    print("KERNEL_OK")
</pallas_src>

<mosaic_0001>
module attributes {stable_mosaic.version = 11 : i64} {
  func.func @kernel(%arg0: i32, %arg1: memref<4x256xf32, #tpu.memory_space<vmem>>, %arg2: memref<9x256xf32, #tpu.memory_space<vmem>>, %arg3: memref<4x1xf32, #tpu.memory_space<vmem>>, %arg4: memref<4x1xf32, #tpu.memory_space<vmem>>, %arg5: memref<4x36xf32, #tpu.memory_space<vmem>>, %arg6: memref<4x1xf32, #tpu.memory_space<vmem>>, %arg7: memref<4x36xf32, #tpu.memory_space<vmem>>, %arg8: memref<4x256xf32, #tpu.memory_space<vmem>>, %arg9: memref<36x256xf32, #tpu.memory_space<vmem>>) attributes {dimension_semantics = [#tpu.dimension_semantics<parallel>], iteration_bounds = array<i64: 2>, scalar_prefetch = 0 : i64, scratch_operands = 1 : i64, tpu.core_type = #tpu.core_type<tc>, window_params = [{transform_indices = @transform_0, window_bounds = array<i64: 4, 256>}, {pipeline_mode = #tpu.pipeline_mode<synchronous>, transform_indices = @transform_1, window_bounds = array<i64: 9, 256>}, {pipeline_mode = #tpu.pipeline_mode<synchronous>, transform_indices = @transform_2, window_bounds = array<i64: 4, 1>}, {pipeline_mode = #tpu.pipeline_mode<synchronous>, transform_indices = @transform_3, window_bounds = array<i64: 4, 1>}, {pipeline_mode = #tpu.pipeline_mode<synchronous>, transform_indices = @transform_4, window_bounds = array<i64: 4, 36>}, {pipeline_mode = #tpu.pipeline_mode<synchronous>, transform_indices = @transform_5, window_bounds = array<i64: 4, 1>}, {pipeline_mode = #tpu.pipeline_mode<synchronous>, transform_indices = @transform_6, window_bounds = array<i64: 4, 36>}, {transform_indices = @transform_7, window_bounds = array<i64: 4, 256>}]} {
    %c0 = arith.constant 0 : index
    %c0_0 = arith.constant 0 : index
    %0 = vector.load %arg1[%c0, %c0_0] : memref<4x256xf32, #tpu.memory_space<vmem>>, vector<4x256xf32>
    %c0_1 = arith.constant 0 : index
    %c0_2 = arith.constant 0 : index
    %1 = vector.load %arg3[%c0_1, %c0_2] : memref<4x1xf32, #tpu.memory_space<vmem>>, vector<4x1xf32>
    %2 = vector.broadcast %1 : vector<4x1xf32> to vector<4x256xf32>
    %3 = arith.mulf %0, %2 : vector<4x256xf32>
    %c0_3 = arith.constant 0 : index
    %c0_4 = arith.constant 0 : index
    %4 = vector.load %arg4[%c0_3, %c0_4] : memref<4x1xf32, #tpu.memory_space<vmem>>, vector<4x1xf32>
    %5 = vector.broadcast %4 : vector<4x1xf32> to vector<4x256xf32>
    %6 = arith.addf %3, %5 : vector<4x256xf32>
    %cst = arith.constant 0.000000e+00 : f32
    %7 = vector.broadcast %cst : f32 to vector<4x256xf32>
    %8 = arith.maximumf %6, %7 : vector<4x256xf32>
    %c0_5 = arith.constant 0 : index
    %c0_6 = arith.constant 0 : index
    %9 = vector.load %arg5[%c0_5, %c0_6] : memref<4x36xf32, #tpu.memory_space<vmem>>, vector<4x36xf32>
    %c17_i32 = arith.constant 17 : i32
    %10 = tpu.dynamic_rotate %8 by %c17_i32 dim 1 : vector<4x256xf32>, i32 -> vector<4x256xf32>
    %c0_7 = arith.constant 0 : index
    %c0_8 = arith.constant 0 : index
    %11 = vector.load %arg2[%c0_7, %c0_8] : memref<9x256xf32, #tpu.memory_space<vmem>>, vector<1x256xf32>
    %12 = vector.broadcast %11 : vector<1x256xf32> to vector<4x256xf32>
    %13 = arith.mulf %10, %12 : vector<4x256xf32>
    %c0_9 = arith.constant 0 : index
    %c0_10 = arith.constant 0 : index
    %14 = vector.load %arg9[%c0_9, %c0_10] : memref<36x256xf32, #tpu.memory_space<vmem>>, vector<4x256xf32>
    tpu.vector_store %arg9[%c0_9, %c0_10], %13 {strides = array<i32>} : memref<36x256xf32, #tpu.memory_space<vmem>>, vector<4x256xf32>,
    %c16_i32 = arith.constant 16 : i32
    %15 = tpu.dynamic_rotate %8 by %c16_i32 dim 1 : vector<4x256xf32>, i32 -> vector<4x256xf32>
    %c1 = arith.constant 1 : index
    %c0_11 = arith.constant 0 : index
    %16 = vector.load %arg2[%c1, %c0_11] : memref<9x256xf32, #tpu.memory_space<vmem>>, vector<1x256xf32>
    %17 = vector.broadcast %16 : vector<1x256xf32> to vector<4x256xf32>
    %18 = arith.mulf %15, %17 : vector<4x256xf32>
    %c4 = arith.constant 4 : index
    %c0_12 = arith.constant 0 : index
    %19 = vector.load %arg9[%c4, %c0_12] : memref<36x256xf32, #tpu.memory_space<vmem>>, vector<4x256xf32>
    tpu.vector_store %arg9[%c4, %c0_12], %18 {strides = array<i32>} : memref<36x256xf32, #tpu.memory_space<vmem>>, vector<4x256xf32>,
    %c15_i32 = arith.constant 15 : i32
    %20 = tpu.dynamic_rotate %8 by %c15_i32 dim 1 : vector<4x256xf32>, i32 -> vector<4x256xf32>
    %c2 = arith.constant 2 : index
    %c0_13 = arith.constant 0 : index
    %21 = vector.load %arg2[%c2, %c0_13] : memref<9x256xf32, #tpu.memory_space<vmem>>, vector<1x256xf32>
    %22 = vector.broadcast %21 : vector<1x256xf32> to vector<4x256xf32>
    %23 = arith.mulf %20, %22 : vector<4x256xf32>
    %c8 = arith.constant 8 : index
    %c0_14 = arith.constant 0 : index
    %24 = vector.load %arg9[%c8, %c0_14] : memref<36x256xf32, #tpu.memory_space<vmem>>, vector<4x256xf32>
    tpu.vector_store %arg9[%c8, %c0_14], %23 {strides = array<i32>} : memref<36x256xf32, #tpu.memory_space<vmem>>, vector<4x256xf32>,
    %c1_i32 = arith.constant 1 : i32
    %25 = tpu.dynamic_rotate %8 by %c1_i32 dim 1 : vector<4x256xf32>, i32 -> vector<4x256xf32>
    %c3 = arith.constant 3 : index
    %c0_15 = arith.constant 0 : index
    %26 = vector.load %arg2[%c3, %c0_15] : memref<9x256xf32, #tpu.memory_space<vmem>>, vector<1x256xf32>
    %27 = vector.broadcast %26 : vector<1x256xf32> to vector<4x256xf32>
    %28 = arith.mulf %25, %27 : vector<4x256xf32>
    %c12 = arith.constant 12 : index
    %c0_16 = arith.constant 0 : index
    %29 = vector.load %arg9[%c12, %c0_16] : memref<36x256xf32, #tpu.memory_space<vmem>>, vector<4x256xf32>
    tpu.vector_store %arg9[%c12, %c0_16], %28 {strides = array<i32>} : memref<36x256xf32, #tpu.memory_space<vmem>>, vector<4x256xf32>,
    %c16 = arith.constant 16 : index
    %c0_17 = arith.constant 0 : index
    %30 = vector.load %arg9[%c16, %c0_17] : memref<36x256xf32, #tpu.memory_space<vmem>>, vector<4x256xf32>
    tpu.vector_store %arg9[%c16, %c0_17], %8 {strides = array<i32>} : memref<36x256xf32, #tpu.memory_space<vmem>>, vector<4x256xf32>,
    %c255_i32 = arith.constant 255 : i32
    %31 = tpu.dynamic_rotate %8 by %c255_i32 dim 1 : vector<4x256xf32>, i32 -> vector<4x256xf32>
    %c5 = arith.constant 5 : index
    %c0_18 = arith.constant 0 : index
    %32 = vector.load %arg2[%c5, %c0_18] : memref<9x256xf32, #tpu.memory_space<vmem>>, vector<1x256xf32>
    %33 = vector.broadcast %32 : vector<1x256xf32> to vector<4x256xf32>
    %34 = arith.mulf %31, %33 : vector<4x256xf32>
    %c20 = arith.constant 20 : index
    %c0_19 = arith.constant 0 : index
    %35 = vector.load %arg9[%c20, %c0_19] : memref<36x256xf32, #tpu.memory_space<vmem>>, vector<4x256xf32>
    tpu.vector_store %arg9[%c20, %c0_19], %34 {strides = array<i32>} : memref<36x256xf32, #tpu.memory_space<vmem>>, vector<4x256xf32>,
    %c241_i32 = arith.constant 241 : i32
    %36 = tpu.dynamic_rotate %8 by %c241_i32 dim 1 : vector<4x256xf32>, i32 -> vector<4x256xf32>
    %c6 = arith.constant 6 : index
    %c0_20 = arith.constant 0 : index
    %37 = vector.load %arg2[%c6, %c0_20] : memref<9x256xf32, #tpu.memory_space<vmem>>, vector<1x256xf32>
    %38 = vector.broadcast %37 : vector<1x256xf32> to vector<4x256xf32>
    %39 = arith.mulf %36, %38 : vector<4x256xf32>
    %c24 = arith.constant 24 : index
    %c0_21 = arith.constant 0 : index
    %40 = vector.load %arg9[%c24, %c0_21] : memref<36x256xf32, #tpu.memory_space<vmem>>, vector<4x256xf32>
    tpu.vector_store %arg9[%c24, %c0_21], %39 {strides = array<i32>} : memref<36x256xf32, #tpu.memory_space<vmem>>, vector<4x256xf32>,
    %c240_i32 = arith.constant 240 : i32
    %41 = tpu.dynamic_rotate %8 by %c240_i32 dim 1 : vector<4x256xf32>, i32 -> vector<4x256xf32>
    %c7 = arith.constant 7 : index
    %c0_22 = arith.constant 0 : index
    %42 = vector.load %arg2[%c7, %c0_22] : memref<9x256xf32, #tpu.memory_space<vmem>>, vector<1x256xf32>
    %43 = vector.broadcast %42 : vector<1x256xf32> to vector<4x256xf32>
    %44 = arith.mulf %41, %43 : vector<4x256xf32>
    %c28 = arith.constant 28 : index
    %c0_23 = arith.constant 0 : index
    %45 = vector.load %arg9[%c28, %c0_23] : memref<36x256xf32, #tpu.memory_space<vmem>>, vector<4x256xf32>
    tpu.vector_store %arg9[%c28, %c0_23], %44 {strides = array<i32>} : memref<36x256xf32, #tpu.memory_space<vmem>>, vector<4x256xf32>,
    %c239_i32 = arith.constant 239 : i32
    %46 = tpu.dynamic_rotate %8 by %c239_i32 dim 1 : vector<4x256xf32>, i32 -> vector<4x256xf32>
    %c8_24 = arith.constant 8 : index
    %c0_25 = arith.constant 0 : index
    %47 = vector.load %arg2[%c8_24, %c0_25] : memref<9x256xf32, #tpu.memory_space<vmem>>, vector<1x256xf32>
    %48 = vector.broadcast %47 : vector<1x256xf32> to vector<4x256xf32>
    %49 = arith.mulf %46, %48 : vector<4x256xf32>
    %c32 = arith.constant 32 : index
    %c0_26 = arith.constant 0 : index
    %50 = vector.load %arg9[%c32, %c0_26] : memref<36x256xf32, #tpu.memory_space<vmem>>, vector<4x256xf32>
    tpu.vector_store %arg9[%c32, %c0_26], %49 {strides = array<i32>} : memref<36x256xf32, #tpu.memory_space<vmem>>, vector<4x256xf32>,
    %c0_27 = arith.constant 0 : index
    %c0_28 = arith.constant 0 : index
    %51 = vector.load %arg9[%c0_27, %c0_28] : memref<36x256xf32, #tpu.memory_space<vmem>>, vector<36x256xf32>
    %cst_29 = arith.constant dense<0.000000e+00> : vector<4x256xf32>
    %52 = tpu.matmul %9, %51, %cst_29 {dimension_numbers = #tpu.dot_dimension_numbers<[1], [0], [0], [1], [0, 0, 1, 1], [], []>} : vector<4x36xf32>, vector<36x256xf32>, vector<4x256xf32> -> vector<4x256xf32>
    %c0_30 = arith.constant 0 : index
    %c0_31 = arith.constant 0 : index
    %53 = vector.load %arg6[%c0_30, %c0_31] : memref<4x1xf32, #tpu.memory_space<vmem>>, vector<4x1xf32>
    %54 = vector.broadcast %53 : vector<4x1xf32> to vector<4x256xf32>
    %55 = arith.addf %52, %54 : vector<4x256xf32>
    %cst_32 = arith.constant 0.000000e+00 : f32
    %56 = vector.broadcast %cst_32 : f32 to vector<4x256xf32>
    %57 = arith.maximumf %55, %56 : vector<4x256xf32>
    %c0_33 = arith.constant 0 : index
    %c0_34 = arith.constant 0 : index
    %58 = vector.load %arg7[%c0_33, %c0_34] : memref<4x36xf32, #tpu.memory_space<vmem>>, vector<4x36xf32>
    %c17_i32_35 = arith.constant 17 : i32
    %59 = tpu.dynamic_rotate %57 by %c17_i32_35 dim 1 : vector<4x256xf32>, i32 -> vector<4x256xf32>
    %c0_36 = arith.constant 0 : index
    %c0_37 = arith.constant 0 : index
    %60 = vector.load %arg2[%c0_36, %c0_37] : memref<9x256xf32, #tpu.memory_space<vmem>>, vector<1x256xf32>
    %61 = vector.broadcast %60 : vector<1x256xf32> to vector<4x256xf32>
    %62 = arith.mulf %59, %61 : vector<4x256xf32>
    %c0_38 = arith.constant 0 : index
    %c0_39 = arith.constant 0 : index
    %63 = vector.load %arg9[%c0_38, %c0_39] : memref<36x256xf32, #tpu.memory_space<vmem>>, vector<4x256xf32>
    tpu.vector_store %arg9[%c0_38, %c0_39], %62 {strides = array<i32>} : memref<36x256xf32, #tpu.memory_space<vmem>>, vector<4x256xf32>,
    %c16_i32_40 = arith.constant 16 : i32
    %64 = tpu.dynamic_rotate %57 by %c16_i32_40 dim 1 : vector<4x256xf32>, i32 -> vector<4x256xf32>
    %c1_41 = arith.constant 1 : index
    %c0_42 = arith.constant 0 : index
    %65 = vector.load %arg2[%c1_41, %c0_42] : memref<9x256xf32, #tpu.memory_space<vmem>>, vector<1x256xf32>
    %66 = vector.broadcast %65 : vector<1x256xf32> to vector<4x256xf32>
    %67 = arith.mulf %64, %66 : vector<4x256xf32>
    %c4_43 = arith.constant 4 : index
    %c0_44 = arith.constant 0 : index
    %68 = vector.load %arg9[%c4_43, %c0_44] : memref<36x256xf32, #tpu.memory_space<vmem>>, vector<4x256xf32>
    tpu.vector_store %arg9[%c4_43, %c0_44], %67 {strides = array<i32>} : memref<36x256xf32, #tpu.memory_space<vmem>>, vector<4x256xf32>,
    %c15_i32_45 = arith.constant 15 : i32
    %69 = tpu.dynamic_rotate %57 by %c15_i32_45 dim 1 : vector<4x256xf32>, i32 -> vector<4x256xf32>
    %c2_46 = arith.constant 2 : index
    %c0_47 = arith.constant 0 : index
    %70 = vector.load %arg2[%c2_46, %c0_47] : memref<9x256xf32, #tpu.memory_space<vmem>>, vector<1x256xf32>
    %71 = vector.broadcast %70 : vector<1x256xf32> to vector<4x256xf32>
    %72 = arith.mulf %69, %71 : vector<4x256xf32>
    %c8_48 = arith.constant 8 : index
    %c0_49 = arith.constant 0 : index
    %73 = vector.load %arg9[%c8_48, %c0_49] : memref<36x256xf32, #tpu.memory_space<vmem>>, vector<4x256xf32>
    tpu.vector_store %arg9[%c8_48, %c0_49], %72 {strides = array<i32>} : memref<36x256xf32, #tpu.memory_space<vmem>>, vector<4x256xf32>,
    %c1_i32_50 = arith.constant 1 : i32
    %74 = tpu.dynamic_rotate %57 by %c1_i32_50 dim 1 : vector<4x256xf32>, i32 -> vector<4x256xf32>
    %c3_51 = arith.constant 3 : index
    %c0_52 = arith.constant 0 : index
    %75 = vector.load %arg2[%c3_51, %c0_52] : memref<9x256xf32, #tpu.memory_space<vmem>>, vector<1x256xf32>
    %76 = vector.broadcast %75 : vector<1x256xf32> to vector<4x256xf32>
    %77 = arith.mulf %74, %76 : vector<4x256xf32>
    %c12_53 = arith.constant 12 : index
    %c0_54 = arith.constant 0 : index
    %78 = vector.load %arg9[%c12_53, %c0_54] : memref<36x256xf32, #tpu.memory_space<vmem>>, vector<4x256xf32>
    tpu.vector_store %arg9[%c12_53, %c0_54], %77 {strides = array<i32>} : memref<36x256xf32, #tpu.memory_space<vmem>>, vector<4x256xf32>,
    %c16_55 = arith.constant 16 : index
    %c0_56 = arith.constant 0 : index
    %79 = vector.load %arg9[%c16_55, %c0_56] : memref<36x256xf32, #tpu.memory_space<vmem>>, vector<4x256xf32>
    tpu.vector_store %arg9[%c16_55, %c0_56], %57 {strides = array<i32>} : memref<36x256xf32, #tpu.memory_space<vmem>>, vector<4x256xf32>,
    %c255_i32_57 = arith.constant 255 : i32
    %80 = tpu.dynamic_rotate %57 by %c255_i32_57 dim 1 : vector<4x256xf32>, i32 -> vector<4x256xf32>
    %c5_58 = arith.constant 5 : index
    %c0_59 = arith.constant 0 : index
    %81 = vector.load %arg2[%c5_58, %c0_59] : memref<9x256xf32, #tpu.memory_space<vmem>>, vector<1x256xf32>
    %82 = vector.broadcast %81 : vector<1x256xf32> to vector<4x256xf32>
    %83 = arith.mulf %80, %82 : vector<4x256xf32>
    %c20_60 = arith.constant 20 : index
    %c0_61 = arith.constant 0 : index
    %84 = vector.load %arg9[%c20_60, %c0_61] : memref<36x256xf32, #tpu.memory_space<vmem>>, vector<4x256xf32>
    tpu.vector_store %arg9[%c20_60, %c0_61], %83 {strides = array<i32>} : memref<36x256xf32, #tpu.memory_space<vmem>>, vector<4x256xf32>,
    %c241_i32_62 = arith.constant 241 : i32
    %85 = tpu.dynamic_rotate %57 by %c241_i32_62 dim 1 : vector<4x256xf32>, i32 -> vector<4x256xf32>
    %c6_63 = arith.constant 6 : index
    %c0_64 = arith.constant 0 : index
    %86 = vector.load %arg2[%c6_63, %c0_64] : memref<9x256xf32, #tpu.memory_space<vmem>>, vector<1x256xf32>
    %87 = vector.broadcast %86 : vector<1x256xf32> to vector<4x256xf32>
    %88 = arith.mulf %85, %87 : vector<4x256xf32>
    %c24_65 = arith.constant 24 : index
    %c0_66 = arith.constant 0 : index
    %89 = vector.load %arg9[%c24_65, %c0_66] : memref<36x256xf32, #tpu.memory_space<vmem>>, vector<4x256xf32>
    tpu.vector_store %arg9[%c24_65, %c0_66], %88 {strides = array<i32>} : memref<36x256xf32, #tpu.memory_space<vmem>>, vector<4x256xf32>,
    %c240_i32_67 = arith.constant 240 : i32
    %90 = tpu.dynamic_rotate %57 by %c240_i32_67 dim 1 : vector<4x256xf32>, i32 -> vector<4x256xf32>
    %c7_68 = arith.constant 7 : index
    %c0_69 = arith.constant 0 : index
    %91 = vector.load %arg2[%c7_68, %c0_69] : memref<9x256xf32, #tpu.memory_space<vmem>>, vector<1x256xf32>
    %92 = vector.broadcast %91 : vector<1x256xf32> to vector<4x256xf32>
    %93 = arith.mulf %90, %92 : vector<4x256xf32>
    %c28_70 = arith.constant 28 : index
    %c0_71 = arith.constant 0 : index
    %94 = vector.load %arg9[%c28_70, %c0_71] : memref<36x256xf32, #tpu.memory_space<vmem>>, vector<4x256xf32>
    tpu.vector_store %arg9[%c28_70, %c0_71], %93 {strides = array<i32>} : memref<36x256xf32, #tpu.memory_space<vmem>>, vector<4x256xf32>,
    %c239_i32_72 = arith.constant 239 : i32
    %95 = tpu.dynamic_rotate %57 by %c239_i32_72 dim 1 : vector<4x256xf32>, i32 -> vector<4x256xf32>
    %c8_73 = arith.constant 8 : index
    %c0_74 = arith.constant 0 : index
    %96 = vector.load %arg2[%c8_73, %c0_74] : memref<9x256xf32, #tpu.memory_space<vmem>>, vector<1x256xf32>
    %97 = vector.broadcast %96 : vector<1x256xf32> to vector<4x256xf32>
    %98 = arith.mulf %95, %97 : vector<4x256xf32>
    %c32_75 = arith.constant 32 : index
    %c0_76 = arith.constant 0 : index
    %99 = vector.load %arg9[%c32_75, %c0_76] : memref<36x256xf32, #tpu.memory_space<vmem>>, vector<4x256xf32>
    tpu.vector_store %arg9[%c32_75, %c0_76], %98 {strides = array<i32>} : memref<36x256xf32, #tpu.memory_space<vmem>>, vector<4x256xf32>,
    %c0_77 = arith.constant 0 : index
    %c0_78 = arith.constant 0 : index
    %100 = vector.load %arg9[%c0_77, %c0_78] : memref<36x256xf32, #tpu.memory_space<vmem>>, vector<36x256xf32>
    %cst_79 = arith.constant dense<0.000000e+00> : vector<4x256xf32>
    %101 = tpu.matmul %58, %100, %cst_79 {dimension_numbers = #tpu.dot_dimension_numbers<[1], [0], [0], [1], [0, 0, 1, 1], [], []>} : vector<4x36xf32>, vector<36x256xf32>, vector<4x256xf32> -> vector<4x256xf32>
    %102 = arith.addf %101, %0 : vector<4x256xf32>
    %c0_80 = arith.constant 0 : index
    %c0_81 = arith.constant 0 : index
    %103 = vector.load %arg8[%c0_80, %c0_81] : memref<4x256xf32, #tpu.memory_space<vmem>>, vector<4x256xf32>
    tpu.vector_store %arg8[%c0_80, %c0_81], %102 {strides = array<i32>} : memref<4x256xf32, #tpu.memory_space<vmem>>, vector<4x256xf32>,
    return
  }
  func.func @transform_0(%arg0: i32) -> (i32, i32) {
    %c0_i32 = arith.constant 0 : i32
    %c0_i32_0 = arith.constant 0 : i32
    return %c0_i32, %arg0 : i32, i32
  }
  func.func @transform_1(%arg0: i32) -> (i32, i32) {
    %c0_i32 = arith.constant 0 : i32
    %c0_i32_0 = arith.constant 0 : i32
    %c0_i32_1 = arith.constant 0 : i32
    return %c0_i32, %c0_i32_0 : i32, i32
  }
  func.func @transform_2(%arg0: i32) -> (i32, i32) {
    %c0_i32 = arith.constant 0 : i32
    %c0_i32_0 = arith.constant 0 : i32
    %c0_i32_1 = arith.constant 0 : i32
    return %c0_i32, %c0_i32_0 : i32, i32
  }
  func.func @transform_3(%arg0: i32) -> (i32, i32) {
    %c0_i32 = arith.constant 0 : i32
    %c0_i32_0 = arith.constant 0 : i32
    %c0_i32_1 = arith.constant 0 : i32
    return %c0_i32, %c0_i32_0 : i32, i32
  }
  func.func @transform_4(%arg0: i32) -> (i32, i32) {
    %c0_i32 = arith.constant 0 : i32
    %c0_i32_0 = arith.constant 0 : i32
    %c0_i32_1 = arith.constant 0 : i32
    return %c0_i32, %c0_i32_0 : i32, i32
  }
  func.func @transform_5(%arg0: i32) -> (i32, i32) {
    %c0_i32 = arith.constant 0 : i32
    %c0_i32_0 = arith.constant 0 : i32
    %c0_i32_1 = arith.constant 0 : i32
    return %c0_i32, %c0_i32_0 : i32, i32
  }
  func.func @transform_6(%arg0: i32) -> (i32, i32) {
    %c0_i32 = arith.constant 0 : i32
    %c0_i32_0 = arith.constant 0 : i32
    %c0_i32_1 = arith.constant 0 : i32
    return %c0_i32, %c0_i32_0 : i32, i32
  }
  func.func @transform_7(%arg0: i32) -> (i32, i32) {
    %c0_i32 = arith.constant 0 : i32
    %c0_i32_0 = arith.constant 0 : i32
    return %c0_i32, %arg0 : i32, i32
  }
}

</mosaic_0001>

<bundles_post_ra>
// kernel: tpu_custom_call.1
= control target key start
LH: loop header
LB: loop body
LE: loop exit
PB: predicated region body
PF: predicated region fallthrough
CT: control target
= control target key end

     0   :  { %12 = vsyncpa [#allocation4], 0  ;;  %s1728_s0 = inlined_call_operand.hbm [shape: f32[4,512], index: 0, kind: input, shape index: {}]   ;;  %s1729_s1 = inlined_call_operand.hbm [shape: f32[9,256], index: 1, kind: input, shape index: {}]   ;;  %s1730_s2 = inlined_call_operand.vmem [shape: f32[4,1], index: 2, kind: input, shape index: {}]   ;;  %s1731_s3 = inlined_call_operand.vmem [shape: f32[4,1], index: 3, kind: input, shape index: {}]   ;;  %s1732_s4 = inlined_call_operand.vmem [shape: f32[4,36], index: 4, kind: input, shape index: {}]   ;;  %s1733_s5 = inlined_call_operand.vmem [shape: f32[4,1], index: 5, kind: input, shape index: {}]   ;;  %s1734_s6 = inlined_call_operand.vmem [shape: f32[4,36], index: 6, kind: input, shape index: {}]   ;;  %s1735_s7 = inlined_call_operand.hbm [shape: f32[4,512], index: 7, kind: output, shape index: {}]  }
   0x1   :  { %14 = vsyncpa [#allocation4 + $0x1], 0 }
   0x2   :  { %15 = vsyncpa [#allocation7], 0 }
   0x3   :  { %16 = vsyncpa [#allocation5], 0 }
   0x4   :  { %18 = vsyncpa [#allocation5 + $0x1], 0  ;;  %s1359_s24 = smov 0   ;;  %s1361_s25 = smov 0  }
   0x5   :  { %s1363_s26 = smov 0   ;;  %s1365_s27 = smov 0  }
   0x6 LB: > { %s1380_s28 = sadd.s32 4294967295, %s1301_s27   ;;  %s1061_s29 = sadd.s32 4294967294, %s1301_s27   ;;  %s1301_s27 = sphi %s1365_s27, %s1755_s27   ;;  %s1297_s26 = sphi %s1363_s26, %s1754_s26   ;;  %s1293_s25 = sphi %s1361_s25, %s1753_s25   ;;  %s1289_s24 = sphi %s1359_s24, %s1752_s24  }
   0x7   : > { %p44_p0 = scmp.ne.s32.totalorder %s1293_s25, %s1289_s24  ;;  %p1736_p1 = scmp.eq.s32.totalorder %s1380_s28, 0 }
   0x8   : > { %p200_p3 = scmp.eq.s32.totalorder %s1061_s29, 1  ;;  %p1062_p5 = scmp.ge.s32.totalorder %s1301_s27, 1 }
   0x9   : > { %p1389_p4 = por %p1736_p1, %p44_p0  ;;  %p207_p7 = scmp.lt.s32.totalorder %s1301_s27, 3 }
   0xa   : > { %p1394_p6 = por %p200_p3, %p44_p0  ;;  %s1303_s10 = smov [#allocation6]  }
   0xb   : > { %s1739_s30 = scalar_select %p1389_p4, 1, 0 }
   0xc   : > { %s1740_s8 = scalar_select %p1394_p6, 1, 0 }
   0xd   : > { %p1399_p8 = pnand %p1062_p5, %p207_p7  ;;  %s219_s11 = sshll.u32 %s1303_s10, 4  ;;  %s1403_s11 = int_to_ptr.vmem [resolvable:$true] %s219_s11 }
   0xe   : > { %s1415_s13 = sadd.s32 1, %s1301_s27   ;;  %s31_s14 = sadd.s32 1, %s1297_s26 }
   0xf   : > { %s1741_s9 = scalar_select %p1399_p8, 1, 0 }
  0x10   : > { %p1109_p9 = pneg %p1399_p8  ;;  %s28_s15 = ssub.s32 %s1301_s27, %s1415_s13 }
  0x11   : > { %s1173_s18 = scalar_lea.hbm %s1729_s1, 512 }
  0x12   : > { %p1410_p11 = pnand %p1109_p9, %p1736_p1  ;;  %p1174_p12 = scmp.ne.s32.totalorder %s1729_s1, %s1173_s18 }
  0x13   : > { %p1180_p5 = scmp.lt.u32.totalorder %s1173_s18, %s1729_s1 }
  0x14   : > { %p1175_p13 = pneg %p1410_p11 }
  0x16   : > { %p1176_p0 = pnand %p1175_p13, %p1174_p12 }
  0x18   : > { %p1177_p3 = pneg %p1176_p0 }
  0x1a   : > { %p1182_p7 = pnand %p1180_p5, %p1177_p3 }
  0x1c   : > { %1185 = shalt.err (!%p1182_p7)
}
  0x1d   : > { %s1186_s23 = scalar_lea.vmem %s1403_s11, 512  ;;  %p1194_p2 = scmp.lt.s32.totalorder %s1403_s11, %s1403_s11 }
  0x1e   : > { %p1187_p9 = scmp.ne.s32.totalorder %s1403_s11, %s1186_s23  ;;  %p1195_p6 = scmp.lt.s32.totalorder %s1186_s23, %s1186_s23 }
  0x20   : > { %p1189_p10 = pnand %p1187_p9, %p1175_p13  ;;  %p1196_p4 = por %p1195_p6, %p1194_p2 }
  0x22   : > { %p1190_p1 = pneg %p1189_p10 }
  0x24   : > { %p1197_p8 = pnand %p1196_p4, %p1190_p1 }
  0x26   : > { %1200 = shalt.err (!%p1197_p8)
}
  0x27   : > { %s1304_s29 = smov 256   ;;  %s1305_s10 = smov 16  }
  0x28   : > { %1112 = dma.hbm_to_vmem [thread:$0]  (!%p1410_p11), %s1729_s1, 512, %s1403_s11, [#allocation7], %s1304_s29, %s1304_s29, %s1305_s10  }
  0x29   : > { %p29_p2 = scmp.eq.s32.totalorder %s28_s15, 0  ;;  %p38_p1 = scmp.ne.s32.totalorder %s1297_s26, %s1293_s25 }
  0x2a   : > { %p39_p4 = scmp.eq.s32.totalorder %s1301_s27, 0  ;;  %p1122_p6 = scmp.lt.s32.totalorder %s1301_s27, 2 }
  0x2b   : > { %s1446_s18 = scalar_select %p29_p2, %s1297_s26, %s31_s14  }
  0x2c   : > { %p40_p8 = por %p39_p4, %p38_p1  ;;  %p1743_p10 = scmp.eq.s32.totalorder %s1380_s28, 1 }
  0x2d   : > { %s248_s20 = sand.u32 1, %s1297_s26   ;;  %s1083_s21 = sshll.u32 %s1301_s27, 7 }
  0x2e   : > { %p1450_p12 = por %p1743_p10, %p38_p1  ;;  %s1065_s22 = sshll.u32 %s248_s20, 3 }
  0x2f   : > { %s1459_s16 = scalar_lea.hbm %s1728_s0, %s1083_s21  ;;  %s252_s11 = scalar_lea.vmem [#allocation3], %s1065_s22 }
  0x30   : > { %s260_s14 = sshll.u32 %s252_s11, 4  ;;  %p1461_p11 = pnand %p1122_p6, %p40_p8  ;;  %s1465_s14 = int_to_ptr.vmem [resolvable:$true] %s260_s14 }
  0x31   : > { %s249_s29 = scalar_lea.sflag [#allocation4], %s248_s20  ;;  %s1201_s10 = scalar_lea.hbm %s1459_s16, 128 }
  0x32   : > { %p1202_p13 = scmp.ne.s32.totalorder %s1459_s16, %s1201_s10  ;;  %p1203_p0 = pneg %p1461_p11 }
  0x33   : > { %s1206_s22 = scalar_lea.hbm %s1728_s0, 256  ;;  %p1207_p7 = scmp.lt.u32.totalorder %s1459_s16, %s1728_s0 }
  0x34   : > { %p1204_p3 = pnand %p1203_p0, %p1202_p13  ;;  %p1208_p9 = scmp.lt.u32.totalorder %s1206_s22, %s1201_s10 }
  0x35   : > { %p1210_p1 = scmp.lt.u32.totalorder %s1201_s10, %s1459_s16 }
  0x36   : > { %p1205_p5 = pneg %p1204_p3  ;;  %p1209_p2 = por %p1208_p9, %p1207_p7 }
  0x38   : > { %p1211_p4 = por %p1210_p1, %p1209_p2 }
  0x3a   : > { %p1212_p6 = pnand %p1211_p4, %p1205_p5 }
  0x3c   : > { %1215 = shalt.err (!%p1212_p6)
}
  0x3d   : > { %s1216_s20 = scalar_lea.vmem %s1465_s14, 128  ;;  %s1306_s11 = smov [#allocation3]  }
  0x3e   : > { %p1217_p8 = scmp.ne.s32.totalorder %s1465_s14, %s1216_s20  ;;  %s1221_s17 = sshll.u32 %s1306_s11, 4  ;;  %s1222_s17 = int_to_ptr.vmem [resolvable:$false] %s1221_s17 }
  0x3f   : > { %s1223_s21 = scalar_lea.vmem %s1222_s17, 256  ;;  %p1224_p3 = scmp.lt.s32.totalorder %s1465_s14, %s1222_s17 }
  0x40   : > { %p1219_p10 = pnand %p1217_p8, %p1203_p0  ;;  %p1225_p7 = scmp.lt.s32.totalorder %s1223_s21, %s1216_s20 }
  0x42   : > { %p1220_p13 = pneg %p1219_p10  ;;  %p1226_p9 = por %p1225_p7, %p1224_p3 }
  0x44   : > { %p1227_p2 = pnand %p1226_p9, %p1220_p13 }
  0x46   : > { %1230 = shalt.err (!%p1227_p2)
}
  0x47   : > { %1116 = dma.hbm_to_vmem [thread:$0]  (!%p1461_p11), %s1459_s16, 128, %s1465_s14, %s249_s29  }
  0x48   : > { %p1746_p5 = scmp.ne.s32.totalorder %s1741_s9, 0 }
  0x49   : > { %s1495_s10 = sand.u32 (!%p1746_p5), 1, %s1293_s25   ;;  %p1747_p0 = scmp.ne.s32.totalorder (!%p1746_p5), %s1739_s30, 0 }
  0x4a   : > { %269 = sbr.rel (%p1746_p5) target bundleno = 993 (0x3e1), region = 48  ;;  %s1069_s22 = sshll.u32 (!%p1746_p5), %s1495_s10, 3 }
  0x4b   : > { %s272_s12 = scalar_lea.sflag (!%p1746_p5), [#allocation4], %s1495_s10  ;;  %s275_s23 = scalar_lea.vmem (!%p1746_p5), [#allocation3], %s1069_s22 }
  0x51   : > { %1276 = dma.done.wait (%p1747_p0), %s272_s12, 128  }
  0x52   : > { %1278 = vsyncadd (%p1747_p0), %s272_s12, 4294967168  ;;  %p1748_p11 = scmp.eq.s32.totalorder %s1380_s28, 0 }
  0x54   : > { %1280 = dma.done.wait (%p1748_p11), [#allocation7], 512   ;;  %p1749_p1 = pmov %p1748_p11 }
  0x55   : > { %v1307_v0 = vmov 0   ;;  %v313_v1 = vld [vmem:[%s1730_s2] sm:$0xf]  ;;  %v1308_v3 = vmov 839922192   ;;  %v321_v5 = vlaneseq  ;;  %v1515_v11 = vld [vmem:[%s275_s23] sm:$0xff] }
  0x56   : > { %1282 = vsyncadd (%p1749_p1), [#allocation7], 4294966784  ;;  %1171 = vset.pattern.permute.xlu0 %v1307_v0  ;;  %v327_v2 = vld [vmem:[%s1731_s3] sm:$0xf]  ;;  %v319_v4 = vunpack.c.l.s4 %v1308_v3  ;;  %s1309_s30 = smov 1   ;;  %s1310_s29 = smov 16  }
  0x57   : > { %316 = vperm.xlu0 %1171, %v313_v1   ;;  %v322_v7 = vshrl.u32 %v321_v5, 7  ;;  %s1311_s20 = smov 17   ;;  %s1312_s11 = smov 15   ;;  %v575_v18 = vld [vmem:[%s1733_s5] sm:$0xf]  ;;  %v1317_v19 = vmov 0.0  }
  0x58   : > { %v320_v6 = vunpack.c.0.s8 %v319_v4  ;;  %s1313_s17 = smov 127   ;;  %s1314_s21 = smov 112   ;;  %656 = vmatprep.mubr.f32.mxu0 %v1317_v19  ;;  %954 = vmatprep.mubr.f32.mxu1 %v1317_v19  ;;  %v1537_v20 = vand.u32 127, %v321_v5  ;;  %v379_v23 = vld [vmem:[#allocation6 + $0x1] ss:$8 sm:$0x3] }
  0x59   : > { %s1315_s12 = smov 113   ;;  %s1316_s23 = smov 111   ;;  %v1539_v21 = vsub.s32 0, %v322_v7  ;;  %v1541_v22 = vsub.s32 1, %v322_v7  ;;  %vm585_vm8 = vcmask 1043456   ;;  %vm581_vm9 = vcmask 293888  }
  0x5a   : > { %v323_v8 = vsub.s32 %v320_v6, %v322_v7  ;;  %vm375_vm0 = vcmp.lt.s32.totalorder %v1537_v20, 16  ;;  %v433_v28 = vld [vmem:[#allocation6 + $0x3] ss:$8 sm:$0x3]  ;;  %vm429_vm1 = vcmp.lt.s32.totalorder %v1537_v20, 1  ;;  %vm352_vm2 = vcmp.lt.s32.totalorder %v1537_v20, 17 }
  0x5b   : > { %330 = vperm.xlu0 %1171, %v327_v2   ;;  %v384_v26 = vrot.slane %v379_v23, %v1539_v21  ;;  %v388_v27 = vrot.slane %v379_v23, %v1541_v22  ;;  %v438_v35 = vrot.slane %v433_v28, %v1539_v21  ;;  %v442_v36 = vrot.slane %v433_v28, %v1541_v22  ;;  %v355_v37 = vld [vmem:[#allocation6] ss:$8 sm:$0x3]  ;;  %v409_v48 = vld [vmem:[#allocation6 + $0x2] ss:$8 sm:$0x3] }
  0x5c   : > { %v360_v46 = vrot.slane %v355_v37, %v1539_v21  ;;  %v364_v47 = vrot.slane %v355_v37, %v1541_v22  ;;  %vm405_vm3 = vcmp.lt.s32.totalorder %v1537_v20, 15  ;;  %v414_v57 = vrot.slane %v409_v48, %v1539_v21  ;;  %v465_v59 = vld [vmem:[#allocation6 + $0x5] ss:$8 sm:$0x3]  ;;  %s967_s9 = scalar_lea.sflag [#allocation5], %s1495_s10 }
  0x5d   : > { %v418_v58 = vrot.slane %v409_v48, %v1541_v22  ;;  %vm461_vm4 = vcmp.lt.s32.totalorder %v1537_v20, 127  ;;  %v470_v1 = vrot.slane %v465_v59, %v1539_v21  ;;  %v474_v2 = vrot.slane %v465_v59, %v1541_v22  ;;  %v519_v3 = vld [vmem:[#allocation6 + $0x7] ss:$8 sm:$0x3] }
  0x5e   : > { %vm515_vm5 = vcmp.lt.s32.totalorder %v1537_v20, 112  ;;  %vm491_vm6 = vcmp.lt.s32.totalorder %v1537_v20, 113  ;;  %v549_v28 = vld [vmem:[#allocation6 + $0x10] ss:$8 sm:$0x3]  ;;  %vm545_vm7 = vcmp.lt.s32.totalorder %v1537_v20, 111 }
  0x5f   : > { %v665_v20 = vld [vmem:[%s1734_s6] sm:$0xf] }
  0xd6   : > { %v317_v9 = vpop.permute.xlu0 %316 }
  0xd7   : > { %v324_v10 = vrot.slane %v317_v9, %v323_v8 }
  0xd9   : > { %v326_v13 = vmul.f32 %v324_v10, %v1515_v11  ;;  %v524_v10 = vrot.slane %v519_v3, %v1539_v21 }
  0xda   : > { %v331_v12 = vpop.permute.xlu0 %330 }
  0xdb   : > { %v338_v14 = vrot.slane %v331_v12, %v323_v8  ;;  %v528_v12 = vrot.slane %v519_v3, %v1541_v22 }
  0xdd   : > { %v340_v15 = vadd.f32 %v338_v14, %v326_v13  ;;  %v495_v13 = vld [vmem:[#allocation6 + $0x6] ss:$8 sm:$0x3] }
  0xdf   : > { %v341_v16 = vmax.f32 %v340_v15, 0.0 }
  0xe1   : > { %455 = vst [vmem:[#allocation2 + $0x20] sm:$0xf] %v341_v16  ;;  %425 = vrot.lane.b32.xlu0 %v341_v16, %s1309_s30  ;;  %371 = vrot.lane.b32.xlu1 %v341_v16, %s1310_s29  ;;  %v344_v17 = vcombine.high %v341_v16, %v341_v16 }
  0xe3   : > { %456 = vst [vmem:[#allocation2 + $0x28] sm:$0xf] %v344_v17 }
  0xe5   : > { %346 = vrot.lane.b32.xlu0 %v341_v16, %s1311_s20  ;;  %373 = vrot.lane.b32.xlu1 %v344_v17, %s1310_s29 }
  0xe9   : > { %401 = vrot.lane.b32.xlu0 %v341_v16, %s1312_s11  ;;  %427 = vrot.lane.b32.xlu1 %v344_v17, %s1309_s30 }
  0xed   : > { %457 = vrot.lane.b32.xlu0 %v341_v16, %s1313_s17  ;;  %348 = vrot.lane.b32.xlu1 %v344_v17, %s1311_s20 }
  0xf1   : > { %511 = vrot.lane.b32.xlu0 %v341_v16, %s1314_s21  ;;  %403 = vrot.lane.b32.xlu1 %v344_v17, %s1312_s11 }
  0xf5   : > { %487 = vrot.lane.b32.xlu0 %v341_v16, %s1315_s12  ;;  %459 = vrot.lane.b32.xlu1 %v344_v17, %s1313_s17 }
  0xf9   : > { %541 = vrot.lane.b32.xlu0 %v341_v16, %s1316_s23  ;;  %513 = vrot.lane.b32.xlu1 %v344_v17, %s1314_s21 }
  0xfd   : > { %578 = vperm.xlu0 %1171, %v575_v18   ;;  %489 = vrot.lane.b32.xlu1 %v344_v17, %s1315_s12 }
 0x101   : > { %543 = vrot.lane.b32.xlu1 %v344_v17, %s1316_s23 }
 0x153   : > { %v426_v24 = vpop.permute.xlu0 %425  ;;  %v372_v25 = vpop.permute.xlu1 %371 }
 0x157   : > { %v347_v29 = vpop.permute.xlu0 %346  ;;  %v374_v30 = vpop.permute.xlu1 %373 }
 0x158   : > { %v376_v31 = vsel %vm375_vm0, %v372_v25, %v374_v30  ;;  %v377_v32 = vsel %vm375_vm0, %v374_v30, %v372_v25  ;;  %v500_v25 = vrot.slane %v495_v13, %v1539_v21 }
 0x159   : > { %v391_v33 = vmul.f32 %v384_v26, %v377_v32  ;;  %v392_v34 = vmul.f32 %v388_v27, %v376_v31  ;;  %v504_v26 = vrot.slane %v495_v13, %v1541_v22 }
 0x15b   : > { %v395_v38 = vrot.slane %v391_v33, 4  ;;  %v396_v39 = vrot.slane %v392_v34, 4  ;;  %v402_v40 = vpop.permute.xlu0 %401  ;;  %v428_v41 = vpop.permute.xlu1 %427 }
 0x15c   : > { %v430_v42 = vsel %vm429_vm1, %v426_v24, %v428_v41  ;;  %v431_v43 = vsel %vm429_vm1, %v428_v41, %v426_v24  ;;  %v554_v41 = vrot.slane %v549_v28, %v1539_v21 }
 0x15d   : > { %399 = vst [vmem:[#allocation2] sm:$0xf0] %v395_v38  ;;  %400 = vst [vmem:[#allocation2 + $0x8] sm:$0xf0] %v396_v39  ;;  %v445_v44 = vmul.f32 %v438_v35, %v431_v43  ;;  %v446_v45 = vmul.f32 %v442_v36, %v430_v42  ;;  %v558_v42 = vrot.slane %v549_v28, %v1541_v22 }
 0x15f   : > { %v449_v49 = vrot.slane %v445_v44, 4  ;;  %v450_v50 = vrot.slane %v446_v45, 4  ;;  %v349_v51 = vpop.permute.xlu1 %348  ;;  %v458_v54 = vpop.permute.xlu0 %457 }
 0x160   : > { %v353_v52 = vsel %vm352_vm2, %v347_v29, %v349_v51  ;;  %v354_v53 = vsel %vm352_vm2, %v349_v51, %v347_v29 }
 0x161   : > { %453 = vst [vmem:[#allocation2 + $0x10] sm:$0xf0] %v449_v49  ;;  %454 = vst [vmem:[#allocation2 + $0x18] sm:$0xf0] %v450_v50  ;;  %v367_v55 = vmul.f32 %v360_v46, %v354_v53  ;;  %v368_v56 = vmul.f32 %v364_v47, %v353_v52 }
 0x163   : > { %369 = vst [vmem:[#allocation2] sm:$0xf] %v367_v55  ;;  %370 = vst [vmem:[#allocation2 + $0x8] sm:$0xf] %v368_v56  ;;  %v404_v60 = vpop.permute.xlu1 %403  ;;  %v512_v4 = vpop.permute.xlu0 %511  ;;  %v342_v56 = vld [vmem:[%s1732_s4] sm:$0xf] }
 0x164   : > { %v406_v61 = vsel %vm405_vm3, %v402_v40, %v404_v60  ;;  %v407_v62 = vsel %vm405_vm3, %v404_v60, %v402_v40 }
 0x165   : > { %v421_v63 = vmul.f32 %v414_v57, %v407_v62  ;;  %v422_v0 = vmul.f32 %v418_v58, %v406_v61 }
 0x167   : > { %423 = vst [vmem:[#allocation2 + $0x10] sm:$0xf] %v421_v63  ;;  %424 = vst [vmem:[#allocation2 + $0x18] sm:$0xf] %v422_v0  ;;  %v460_v5 = vpop.permute.xlu1 %459  ;;  %v488_v19 = vpop.permute.xlu0 %487 }
 0x168   : > { %v462_v6 = vsel %vm461_vm4, %v458_v54, %v460_v5  ;;  %v463_v7 = vsel %vm461_vm4, %v460_v5, %v458_v54  ;;  %v744_v5 = vld [vmem:[#allocation6 + $0x3] ss:$8 sm:$0x3] }
 0x169   : > { %v477_v8 = vmul.f32 %v470_v1, %v462_v6  ;;  %v478_v9 = vmul.f32 %v474_v2, %v463_v7  ;;  %v694_v1 = vld [vmem:[#allocation6 + $0x1] ss:$8 sm:$0x3]  ;;  %v753_v13 = vrot.slane %v744_v5, %v1541_v22 }
 0x16a   : > { %v566_v27 = vld [vmem:[#allocation2 + $0x8] sm:$0xff]  ;;  %v565_v30 = vld [vmem:[#allocation2] sm:$0xff]  ;;  %v699_v2 = vrot.slane %v694_v1, %v1539_v21  ;;  %v703_v3 = vrot.slane %v694_v1, %v1541_v22 }
 0x16b   : > { %v481_v14 = vrot.slane %v477_v8, 4  ;;  %v482_v15 = vrot.slane %v478_v9, 4  ;;  %v514_v16 = vpop.permute.xlu1 %513  ;;  %v542_v43 = vpop.permute.xlu0 %541 }
 0x16c   : > { %v516_v17 = vsel %vm515_vm5, %v512_v4, %v514_v16  ;;  %v517_v18 = vsel %vm515_vm5, %v514_v16, %v512_v4 }
 0x16d   : > { %485 = vst [vmem:[#allocation2 + $0x20] sm:$0xf0] %v481_v14  ;;  %486 = vst [vmem:[#allocation2 + $0x28] sm:$0xf0] %v482_v15  ;;  %v531_v23 = vmul.f32 %v524_v10, %v516_v17  ;;  %v532_v24 = vmul.f32 %v528_v12, %v517_v18  ;;  %v749_v12 = vrot.slane %v744_v5, %v1539_v21 }
 0x16e   : > { %v568_v29 = vld [vmem:[#allocation2 + $0x18] sm:$0xff]  ;;  %v567_v31 = vld [vmem:[#allocation2 + $0x10] sm:$0xff]  ;;  %v672_v15 = vld [vmem:[#allocation6] ss:$8 sm:$0x3] }
 0x16f   : > { %v535_v32 = vrot.slane %v531_v23, 4  ;;  %v536_v33 = vrot.slane %v532_v24, 4  ;;  %v490_v34 = vpop.permute.xlu1 %489  ;;  %v1085_v35 = vpack.c.bf16 %v568_v29, %v566_v27  ;;  %v1087_v36 = vpack.c.bf16 %v567_v31, %v565_v30  ;;  %v722_v29 = vld [vmem:[#allocation6 + $0x2] ss:$8 sm:$0x3] }
 0x170   : > { %v492_v37 = vsel %vm491_vm6, %v488_v19, %v490_v34  ;;  %v493_v38 = vsel %vm491_vm6, %v490_v34, %v488_v19  ;;  %v681_v27 = vrot.slane %v672_v15, %v1541_v22  ;;  %v852_v5 = vld [vmem:[#allocation6 + $0x10] ss:$8 sm:$0x3] }
 0x171   : > { %539 = vst [vmem:[#allocation2 + $0x30] sm:$0xf0] %v535_v32  ;;  %540 = vst [vmem:[#allocation2 + $0x38] sm:$0xf0] %v536_v33  ;;  %v507_v39 = vmul.f32 %v500_v25, %v492_v37  ;;  %v508_v40 = vmul.f32 %v504_v26, %v493_v38  ;;  %1086 = vmatprep.subr.bf16.mxu0 %v1085_v35  ;;  %v677_v26 = vrot.slane %v672_v15, %v1539_v21 }
 0x172   : > { %1088 = vmatpush1.bf16.msra.mxu0 %v1087_v36  ;;  %v727_v37 = vrot.slane %v722_v29, %v1539_v21  ;;  %v731_v38 = vrot.slane %v722_v29, %v1541_v22 }
 0x173   : > { %509 = vst [vmem:[#allocation2 + $0x30] sm:$0xf] %v507_v39  ;;  %510 = vst [vmem:[#allocation2 + $0x38] sm:$0xf] %v508_v40  ;;  %v544_v44 = vpop.permute.xlu1 %543 }
 0x174   : > { %v546_v45 = vsel %vm545_vm7, %v542_v43, %v544_v44  ;;  %v547_v46 = vsel %vm545_vm7, %v544_v44, %v542_v43  ;;  %v570_v49 = vld [vmem:[#allocation2 + $0x28] sm:$0xff]  ;;  %v569_v51 = vld [vmem:[#allocation2 + $0x20] sm:$0xff] }
 0x175   : > { %v561_v47 = vmul.f32 %v554_v41, %v546_v45  ;;  %v562_v48 = vmul.f32 %v558_v42, %v547_v46  ;;  %v774_v40 = vld [vmem:[#allocation6 + $0x5] ss:$8 sm:$0x3] }
 0x176   : > { %v779_v46 = vrot.slane %v774_v40, %v1539_v21 }
 0x177   : > { %563 = vst [vmem:[#allocation2 + $0x40] sm:$0xf] %v561_v47  ;;  %564 = vst [vmem:[#allocation2 + $0x48] sm:$0xf] %v562_v48  ;;  %v783_v47 = vrot.slane %v774_v40, %v1541_v22 }
 0x17a   : > { %v572_v50 = vld [vmem:[#allocation2 + $0x38] sm:$0xff]  ;;  %v571_v52 = vld [vmem:[#allocation2 + $0x30] sm:$0xff] }
 0x17b   : > { %v1089_v53 = vpack.c.bf16 %v572_v50, %v570_v49  ;;  %v1091_v54 = vpack.c.bf16 %v571_v52, %v569_v51  ;;  %v824_v49 = vld [vmem:[#allocation6 + $0x7] ss:$8 sm:$0x3] }
 0x17c   : > { %v579_v58 = vpop.permute.xlu0 %578 }
 0x17d   : > { %1090 = vmatprep.subr.bf16.mxu0 %v1089_v53 }
 0x17e   : > { %1092 = vmatpush1.bf16.msra.mxu0 %v1091_v54  ;;  %v574_v55 = vld [vmem:[#allocation2 + $0x48] sm:$0xf]  ;;  %v573_v57 = vld [vmem:[#allocation2 + $0x40] sm:$0xf] }
 0x17f   : > { %1072 = vmatprep.subr.msk.mxu0 %vm585_vm8, %v574_v55  ;;  %v829_v55 = vrot.slane %v824_v49, %v1539_v21 }
 0x182   : > { %1073 = vmatpush1.msk.msra.mxu0 %vm585_vm8, %v573_v57 }
 0x183   : > { %1074 = vmatmul.mubr.msk.f32.vlgmr.msra.gmra.mrb[0].mxu0 %vm581_vm9, %v342_v56  ;;  %v833_v56 = vrot.slane %v824_v49, %v1541_v22 }
 0x256   : > { %v658_v59 = vpop.f32.mrb[0].mxu0 }
 0x257   : > { %v659_v60 = vadd.f32 %v658_v59, %v579_v58  ;;  %v660_v61 = vpop.f32.mrb[1].mxu0 }
 0x258   : > { %v661_v62 = vadd.f32 %v660_v61, %v579_v58  ;;  %v802_v58 = vld [vmem:[#allocation6 + $0x6] ss:$8 sm:$0x3] }
 0x259   : > { %v663_v63 = vmax.f32 %v659_v60, 0.0 }
 0x25a   : > { %v664_v0 = vmax.f32 %v661_v62, 0.0 }
 0x25b   : > { %766 = vst [vmem:[#allocation2 + $0x20] sm:$0xf] %v663_v63  ;;  %688 = vrot.lane.b32.xlu1 %v663_v63, %s1310_s29 }
 0x25c   : > { %767 = vst [vmem:[#allocation2 + $0x28] sm:$0xf] %v664_v0  ;;  %690 = vrot.lane.b32.xlu0 %v664_v0, %s1310_s29 }
 0x25f   : > { %738 = vrot.lane.b32.xlu1 %v663_v63, %s1309_s30 }
 0x260   : > { %740 = vrot.lane.b32.xlu0 %v664_v0, %s1309_s30 }
 0x263   : > { %666 = vrot.lane.b32.xlu1 %v663_v63, %s1311_s20 }
 0x264   : > { %668 = vrot.lane.b32.xlu0 %v664_v0, %s1311_s20  ;;  %s1084_s20 = sshll.u32 %s1380_s28, 7  ;;  %s1318_s28 = smov [#allocation8]  }
 0x267   : > { %716 = vrot.lane.b32.xlu1 %v663_v63, %s1312_s11 }
 0x268   : > { %718 = vrot.lane.b32.xlu0 %v664_v0, %s1312_s11  ;;  %s309_s11 = scalar_lea.vmem [#allocation8], %s1069_s22  ;;  %s1235_s22 = sshll.u32 %s1318_s28, 4  ;;  %s1236_s22 = int_to_ptr.vmem [resolvable:$false] %s1235_s22 }
 0x269   : > { %s1237_s14 = scalar_lea.vmem %s1236_s22, 256 }
 0x26b   : > { %768 = vrot.lane.b32.xlu1 %v663_v63, %s1313_s17 }
 0x26c   : > { %770 = vrot.lane.b32.xlu0 %v664_v0, %s1313_s17  ;;  %s981_s17 = sshll.u32 %s309_s11, 4  ;;  %s1686_s17 = int_to_ptr.vmem [resolvable:$true] %s981_s17 }
 0x26d   : > { %s1231_s16 = scalar_lea.vmem %s1686_s17, 128  ;;  %p1238_p10 = scmp.lt.s32.totalorder %s1686_s17, %s1236_s22 }
 0x26e   : > { %p1232_p4 = scmp.ne.s32.totalorder %s1686_s17, %s1231_s16  ;;  %p1239_p13 = scmp.lt.s32.totalorder %s1237_s14, %s1231_s16 }
 0x26f   : > { %818 = vrot.lane.b32.xlu1 %v663_v63, %s1314_s21 }
 0x270   : > { %820 = vrot.lane.b32.xlu0 %v664_v0, %s1314_s21  ;;  %p1233_p6 = pnand %p1232_p4, %p1450_p12  ;;  %p1240_p3 = por %p1239_p13, %p1238_p10 }
 0x272   : > { %p1234_p8 = pneg %p1233_p6 }
 0x273   : > { %796 = vrot.lane.b32.xlu1 %v663_v63, %s1315_s12 }
 0x274   : > { %798 = vrot.lane.b32.xlu0 %v664_v0, %s1315_s12  ;;  %p1241_p7 = pnand %p1240_p3, %p1234_p8 }
 0x277   : > { %846 = vrot.lane.b32.xlu1 %v663_v63, %s1316_s23 }
 0x278   : > { %848 = vrot.lane.b32.xlu0 %v664_v0, %s1316_s23  ;;  %s1684_s23 = scalar_lea.hbm %s1735_s7, %s1084_s20 }
 0x2cd   : > { %v689_v4 = vpop.permute.xlu1 %688 }
 0x2ce   : > { %v691_v6 = vpop.permute.xlu0 %690 }
 0x2cf   : > { %v692_v7 = vsel %vm375_vm0, %v689_v4, %v691_v6  ;;  %v693_v8 = vsel %vm375_vm0, %v691_v6, %v689_v4 }
 0x2d0   : > { %v706_v9 = vmul.f32 %v699_v2, %v693_v8  ;;  %v707_v10 = vmul.f32 %v703_v3, %v692_v7  ;;  %v807_v2 = vrot.slane %v802_v58, %v1539_v21  ;;  %v811_v3 = vrot.slane %v802_v58, %v1541_v22 }
 0x2d1   : > { %v739_v14 = vpop.permute.xlu1 %738 }
 0x2d2   : > { %v710_v16 = vrot.slane %v706_v9, 4  ;;  %v711_v17 = vrot.slane %v707_v10, 4  ;;  %v741_v18 = vpop.permute.xlu0 %740 }
 0x2d3   : > { %v742_v19 = vsel %vm429_vm1, %v739_v14, %v741_v18  ;;  %v743_v23 = vsel %vm429_vm1, %v741_v18, %v739_v14 }
 0x2d4   : > { %714 = vst [vmem:[#allocation2] sm:$0xf0] %v710_v16  ;;  %715 = vst [vmem:[#allocation2 + $0x8] sm:$0xf0] %v711_v17  ;;  %v756_v24 = vmul.f32 %v749_v12, %v743_v23  ;;  %v757_v25 = vmul.f32 %v753_v13, %v742_v19  ;;  %v857_v23 = vrot.slane %v852_v5, %v1539_v21 }
 0x2d5   : > { %v667_v28 = vpop.permute.xlu1 %666 }
 0x2d6   : > { %v760_v30 = vrot.slane %v756_v24, 4  ;;  %v761_v31 = vrot.slane %v757_v25, 4  ;;  %v669_v32 = vpop.permute.xlu0 %668  ;;  %v861_v24 = vrot.slane %v852_v5, %v1541_v22 }
 0x2d7   : > { %v670_v33 = vsel %vm352_vm2, %v667_v28, %v669_v32  ;;  %v671_v34 = vsel %vm352_vm2, %v669_v32, %v667_v28 }
 0x2d8   : > { %764 = vst [vmem:[#allocation2 + $0x10] sm:$0xf0] %v760_v30  ;;  %765 = vst [vmem:[#allocation2 + $0x18] sm:$0xf0] %v761_v31  ;;  %v684_v35 = vmul.f32 %v677_v26, %v671_v34  ;;  %v685_v36 = vmul.f32 %v681_v27, %v670_v33 }
 0x2d9   : > { %v717_v39 = vpop.permute.xlu1 %716 }
 0x2da   : > { %686 = vst [vmem:[#allocation2] sm:$0xf] %v684_v35  ;;  %687 = vst [vmem:[#allocation2 + $0x8] sm:$0xf] %v685_v36  ;;  %v719_v41 = vpop.permute.xlu0 %718 }
 0x2db   : > { %v720_v42 = vsel %vm405_vm3, %v717_v39, %v719_v41  ;;  %v721_v43 = vsel %vm405_vm3, %v719_v41, %v717_v39 }
 0x2dc   : > { %v734_v44 = vmul.f32 %v727_v37, %v721_v43  ;;  %v735_v45 = vmul.f32 %v731_v38, %v720_v42  ;;  %v879_v37 = vcombine.high %v1515_v11, %v1515_v11 }
 0x2dd   : > { %v769_v48 = vpop.permute.xlu1 %768 }
 0x2de   : > { %736 = vst [vmem:[#allocation2 + $0x10] sm:$0xf] %v734_v44  ;;  %737 = vst [vmem:[#allocation2 + $0x18] sm:$0xf] %v735_v45  ;;  %v771_v50 = vpop.permute.xlu0 %770 }
 0x2df   : > { %v772_v51 = vsel %vm461_vm4, %v769_v48, %v771_v50  ;;  %v773_v52 = vsel %vm461_vm4, %v771_v50, %v769_v48 }
 0x2e0   : > { %v786_v53 = vmul.f32 %v779_v46, %v772_v51  ;;  %v787_v54 = vmul.f32 %v783_v47, %v773_v52 }
 0x2e1   : > { %v819_v57 = vpop.permute.xlu1 %818  ;;  %v869_v4 = vld [vmem:[#allocation2 + $0x8] sm:$0xff]  ;;  %v868_v8 = vld [vmem:[#allocation2] sm:$0xff] }
 0x2e2   : > { %v790_v59 = vrot.slane %v786_v53, 4  ;;  %v791_v60 = vrot.slane %v787_v54, 4  ;;  %v821_v61 = vpop.permute.xlu0 %820 }
 0x2e3   : > { %v822_v62 = vsel %vm515_vm5, %v819_v57, %v821_v61  ;;  %v823_v63 = vsel %vm515_vm5, %v821_v61, %v819_v57 }
 0x2e4   : > { %794 = vst [vmem:[#allocation2 + $0x20] sm:$0xf0] %v790_v59  ;;  %795 = vst [vmem:[#allocation2 + $0x28] sm:$0xf0] %v791_v60  ;;  %v836_v0 = vmul.f32 %v829_v55, %v822_v62  ;;  %v837_v1 = vmul.f32 %v833_v56, %v823_v63 }
 0x2e5   : > { %v797_v6 = vpop.permute.xlu1 %796  ;;  %v871_v7 = vld [vmem:[#allocation2 + $0x18] sm:$0xff]  ;;  %v870_v9 = vld [vmem:[#allocation2 + $0x10] sm:$0xff] }
 0x2e6   : > { %v840_v10 = vrot.slane %v836_v0, 4  ;;  %v841_v12 = vrot.slane %v837_v1, 4  ;;  %v799_v13 = vpop.permute.xlu0 %798  ;;  %v1093_v14 = vpack.c.bf16 %v871_v7, %v869_v4  ;;  %v1095_v15 = vpack.c.bf16 %v870_v9, %v868_v8 }
 0x2e7   : > { %v800_v16 = vsel %vm491_vm6, %v797_v6, %v799_v13  ;;  %v801_v17 = vsel %vm491_vm6, %v799_v13, %v797_v6 }
 0x2e8   : > { %844 = vst [vmem:[#allocation2 + $0x30] sm:$0xf0] %v840_v10  ;;  %845 = vst [vmem:[#allocation2 + $0x38] sm:$0xf0] %v841_v12  ;;  %v814_v18 = vmul.f32 %v807_v2, %v800_v16  ;;  %v815_v19 = vmul.f32 %v811_v3, %v801_v17  ;;  %1094 = vmatprep.subr.bf16.mxu1 %v1093_v14 }
 0x2e9   : > { %1096 = vmatpush1.bf16.msra.mxu1 %v1095_v15  ;;  %v847_v25 = vpop.permute.xlu1 %846 }
 0x2ea   : > { %816 = vst [vmem:[#allocation2 + $0x30] sm:$0xf] %v814_v18  ;;  %817 = vst [vmem:[#allocation2 + $0x38] sm:$0xf] %v815_v19  ;;  %v849_v26 = vpop.permute.xlu0 %848 }
 0x2eb   : > { %v850_v27 = vsel %vm545_vm7, %v847_v25, %v849_v26  ;;  %v851_v28 = vsel %vm545_vm7, %v849_v26, %v847_v25  ;;  %v873_v31 = vld [vmem:[#allocation2 + $0x28] sm:$0xff]  ;;  %v872_v21 = vld [vmem:[#allocation2 + $0x20] sm:$0xff] }
 0x2ec   : > { %v864_v29 = vmul.f32 %v857_v23, %v850_v27  ;;  %v865_v30 = vmul.f32 %v861_v24, %v851_v28 }
 0x2ee   : > { %866 = vst [vmem:[#allocation2 + $0x40] sm:$0xf] %v864_v29  ;;  %867 = vst [vmem:[#allocation2 + $0x48] sm:$0xf] %v865_v30 }
 0x2f1   : > { %v875_v32 = vld [vmem:[#allocation2 + $0x38] sm:$0xff]  ;;  %v874_v22 = vld [vmem:[#allocation2 + $0x30] sm:$0xff] }
 0x2f2   : > { %v1097_v33 = vpack.c.bf16 %v875_v32, %v873_v31  ;;  %v1099_v34 = vpack.c.bf16 %v874_v22, %v872_v21 }
 0x2f4   : > { %1098 = vmatprep.subr.bf16.mxu1 %v1097_v33 }
 0x2f5   : > { %1100 = vmatpush1.bf16.msra.mxu1 %v1099_v34  ;;  %v877_v35 = vld [vmem:[#allocation2 + $0x48] sm:$0xf]  ;;  %v876_v36 = vld [vmem:[#allocation2 + $0x40] sm:$0xf] }
 0x2f6   : > { %1075 = vmatprep.subr.msk.mxu1 %vm585_vm8, %v877_v35 }
 0x2f9   : > { %1076 = vmatpush1.msk.msra.mxu1 %vm585_vm8, %v876_v36 }
 0x2fa   : > { %1077 = vmatmul.mubr.msk.f32.vlgmr.msra.gmra.mrb[0].mxu1 %vm581_vm9, %v665_v20 }
 0x3cd   : > { %v956_v38 = vpop.f32.mrb[0].mxu1 }
 0x3ce   : > { %v957_v39 = vadd.f32 %v956_v38, %v1515_v11  ;;  %v958_v40 = vpop.f32.mrb[1].mxu1 }
 0x3cf   : > { %v959_v41 = vadd.f32 %v958_v40, %v879_v37 }
 0x3d1   : > { %v963_v42 = vcombine.low %v957_v39, %v959_v41 }
 0x3d3   : > { %965 = vst [vmem:[%s309_s11] sm:$0xff] %v963_v42 }
 0x3d4   : > { %1244 = shalt.err (!%p1241_p7)
}
 0x3d5   : > { %s1245_s10 = scalar_lea.hbm %s1684_s23, 128  ;;  %s1249_s29 = scalar_lea.hbm %s1735_s7, 256 }
 0x3d6   : > { %p1246_p9 = scmp.ne.s32.totalorder %s1684_s23, %s1245_s10  ;;  %p1250_p0 = scmp.lt.u32.totalorder %s1684_s23, %s1735_s7 }
 0x3d7   : > { %p1251_p11 = scmp.lt.u32.totalorder %s1249_s29, %s1245_s10  ;;  %p1253_p4 = scmp.lt.u32.totalorder %s1245_s10, %s1684_s23 }
 0x3d8   : > { %p1247_p2 = pnand %p1246_p9, %p1450_p12 }
 0x3d9   : > { %p1252_p1 = por %p1251_p11, %p1250_p0 }
 0x3da   : > { %p1248_p5 = pneg %p1247_p2 }
 0x3db   : > { %p1254_p6 = por %p1253_p4, %p1252_p1 }
 0x3dd   : > { %p1255_p8 = pnand %p1254_p6, %p1248_p5 }
 0x3df   : > { %1258 = shalt.err (!%p1255_p8)
}
 0x3e0   : > { %1107 = dma.vmem_to_hbm [thread:$0]  (%p1450_p12), %s1686_s17, 128, %s1684_s23, %s967_s9  }
 0x3e1 PF: > { %s993_s21 = sand.u32 1, %s1289_s24   ;;  %p1750_p10 = scmp.ne.s32.totalorder %s1740_s8, 0 }
 0x3e2   : > { %p1751_p13 = scmp.ge.s32.totalorder %s1301_s27, 2  ;;  %s994_s12 = scalar_lea.sflag [#allocation5], %s993_s21 }
 0x3e4   : > { %p1118_p3 = pnand %p1751_p13, %p1750_p10 }
 0x3e6   : > { %1284 = dma.done.wait (!%p1118_p3), %s994_s12, 128  }
 0x3e7   : > { %1286 = vsyncadd (!%p1118_p3), %s994_s12, 4294967168  ;;  %p21_p7 = scmp.ge.s32.totalorder %s1415_s13, 4   ;;  %s1752_s24 = smov %s1293_s25 }
 0x3e8   : > { %s1753_s25 = smov %s1297_s26  ;;  %s1754_s26 = smov %s1446_s18 }
 0x3e9   : > { %s1755_s27 = smov %s1415_s13  ;;  %23 = sbr.rel (!%p21_p7) target bundleno = 6 (0x6), region = 104 }
 0x3f0   :  { %999 = vsyncpa [#allocation4], 1 }
 0x3f1   :  { %1001 = vsyncpa [#allocation4 + $0x1], 1 }
 0x3f2   :  { %1002 = vsyncpa [#allocation7], 1 }
 0x3f3   :  { %1003 = vsyncpa [#allocation5], 1 }
 0x3f4   :  { %1005 = vsyncpa [#allocation5 + $0x1], 1 }

</bundles_post_ra>
